<compile_context>
chip_gen: v5e
topology: v5e:2x2
jax: 0.10.0
libtpu: 0.0.40
codegen_flags: <defaults>
</compile_context>

<pallas_src>
import jax
import jax.numpy as jnp
from jax import lax
from jax.experimental import pallas as pl
from jax.experimental.pallas import tpu as pltpu


def _round_up(x, m):
    return ((x + m - 1) // m) * m


def _device_kind():
    try:
        return jax.devices()[0].device_kind.lower()
    except Exception:
        return ""


def _choose_tile_b(batch, device_kind):
    """Batch tile: sublane-aligned for tiny batches, 128-aligned otherwise,
    capped at 1024, and split in two on v7x so both TensorCores get work."""
    b8 = _round_up(batch, 8)          # f32 activation sublane tile
    if b8 <= 128:
        return b8                     # tiny batch: single tile, no 128/256 over-pad
    b128 = _round_up(batch, 128)      # 128 M-alignment is enough even on v5e (4x128x128 MXU)
    tile = min(1024, b128)            # big tiles amortize per-grid-step overhead (v6e)
    if "v7" in device_kind and b128 >= 256:
        # guarantee grid >= 2 so the ("parallel",) axis shards across v7x's 2 TCs
        tile = min(tile, _round_up(b128 // 2, 128))
    return tile


def _vmem_limit_bytes(tile_b, s_dim, a_dim, hp, w_itemsize):
    """Size the scoped-VMEM limit from the real footprint (v7x: 64 MiB physical)."""
    weights = 2 * ((s_dim + a_dim + hp) * hp * w_itemsize + 3 * hp * 4)  # double-buffered
    acts = 2 * tile_b * (s_dim + a_dim + 1) * 4                          # in/out tiles, f32
    scratch = 4 * tile_b * hp * 4                                        # h1/h2/casts, f32
    est = weights + acts + scratch
    limit = max(32 * 1024 * 1024, 2 * est)
    try:
        cap = pltpu.get_tpu_info().vmem_capacity_bytes
    except Exception:
        cap = 64 * 1024 * 1024
    return int(min(limit, int(cap * 0.9)))


def critic_kernel(s_ref, a_ref, w1s_ref, w1a_ref, b1_ref, w2_ref, b2_ref,
                  wq_ref, bq_ref, q_ref):
    cdt = w2_ref.dtype  # MXU input dtype (bf16), derived from the prepared params

    # fc1: concat(state, action) @ W1 == state @ W1_s + action @ W1_a  (no concat).
    # Activations arrive f32; cast to cdt here instead of a wrapper HBM pass.
    h1 = jnp.dot(s_ref[...].astype(cdt), w1s_ref[...],
                 preferred_element_type=jnp.float32)
    h1 = h1 + jnp.dot(a_ref[...].astype(cdt), w1a_ref[...],
                      preferred_element_type=jnp.float32)
    h1 = jnp.maximum(h1 + b1_ref[...], 0.0)            # bias + relu in f32 (VPU)

    # fc2
    h2 = jnp.dot(h1.astype(cdt), w2_ref[...], preferred_element_type=jnp.float32)
    h2 = jnp.maximum(h2 + b2_ref[...], 0.0)

    # q-head (hidden -> 1) as a lane-dense row: contract wq's H dim against h2's
    # H dim -> (1, TILE_B), stored unmasked across whole lanes.
    q_row = lax.dot_general(
        wq_ref[...], h2.astype(cdt),
        dimension_numbers=(((1,), (1,)), ((), ())),
        preferred_element_type=jnp.float32)             # (1, TILE_B)
    q_ref[...] = (q_row + bq_ref[0, 0]).astype(q_ref.dtype)


def init_params(key, input_dims, hidden_dim, n_agents, n_actions):
    """Synthetic init mirroring nn.Linear: weight [out, in], bias [out]."""
    in_total = input_dims + n_agents * n_actions
    ks = jax.random.split(key, 6)

    def lin(kw, kb, fan_in, fan_out):
        bound = 1.0 / jnp.sqrt(jnp.float32(fan_in))
        w = jax.random.uniform(kw, (fan_out, fan_in), jnp.float32, -bound, bound)
        b = jax.random.uniform(kb, (fan_out,), jnp.float32, -bound, bound)
        return w, b

    w1, b1 = lin(ks[0], ks[1], in_total, hidden_dim)
    w2, b2 = lin(ks[2], ks[3], hidden_dim, hidden_dim)
    wq, bq = lin(ks[4], ks[5], hidden_dim, 1)
    return (w1, b1, w2, b2, wq, bq)


def prepare_params(torch_params, input_dims, compute_dtype=jnp.bfloat16):
    """One-time prep: split fc1 (state|action), transpose to [in,out], pad hidden
    to a multiple of 128 lanes, cast matmul weights to bf16 (biases stay f32).
    bf16 is used on all TPU generations: v5e's MXU is natively bf16 and the VPU
    (bias/ReLU) path stays f32 in the kernel."""
    w1, b1, w2, b2, wq, bq = torch_params
    H = w1.shape[0]
    Hp = _round_up(max(H, 128), 128)
    ph = Hp - H

    w1s = jnp.pad(w1[:, :input_dims].T, ((0, 0), (0, ph))).astype(compute_dtype)
    w1a = jnp.pad(w1[:, input_dims:].T, ((0, 0), (0, ph))).astype(compute_dtype)
    w2t = jnp.pad(w2.T, ((0, ph), (0, ph))).astype(compute_dtype)
    b1p = jnp.pad(b1, (0, ph)).reshape(1, Hp).astype(jnp.float32)
    b2p = jnp.pad(b2, (0, ph)).reshape(1, Hp).astype(jnp.float32)
    wqp = jnp.pad(wq.reshape(-1), (0, ph)).reshape(1, Hp).astype(compute_dtype)
    bqp = bq.reshape(1, 1).astype(jnp.float32)
    return (w1s, w1a, b1p, w2t, b2p, wqp, bqp)


def critic_forward(state, action, prepared_params):
    """state: [B, input_dims], action: [B, n_agents*n_actions] -> q: [B, 1]."""
    w1s, w1a, b1, w2, b2, wq, bq = prepared_params
    B, S = state.shape
    A = action.shape[1]
    Hp = w2.shape[0]

    tile_b = _choose_tile_b(B, _device_kind())
    b_pad = _round_up(B, tile_b)
    if b_pad != B:  # pad only when needed; no dtype cast (done in-kernel)
        state = jnp.pad(state, ((0, b_pad - B), (0, 0)))
        action = jnp.pad(action, ((0, b_pad - B), (0, 0)))

    grid = (b_pad // tile_b,)
    act_spec = lambda feat: pl.BlockSpec((tile_b, feat), lambda i: (i, 0))
    const_spec = lambda r, c: pl.BlockSpec((r, c), lambda i: (0, 0))  # VMEM-resident

    vmem_limit = _vmem_limit_bytes(tile_b, S, A, Hp, jnp.dtype(w2.dtype).itemsize)

    q_row = pl.pallas_call(
        critic_kernel,
        out_shape=jax.ShapeDtypeStruct((1, b_pad), jnp.float32),  # lane-dense output
        grid=grid,
        in_specs=[
            act_spec(S),            # state tile (f32, cast in-kernel)
            act_spec(A),            # action tile
            const_spec(S, Hp),      # W1_state
            const_spec(A, Hp),      # W1_action
            const_spec(1, Hp),      # b1
            const_spec(Hp, Hp),     # W2
            const_spec(1, Hp),      # b2
            const_spec(1, Hp),      # wq (row)
            pl.BlockSpec(memory_space=pltpu.MemorySpace.SMEM),   # bq scalar in SMEM
        ],
        out_specs=pl.BlockSpec((1, tile_b), lambda i: (0, i)),
        compiler_params=pltpu.CompilerParams(
            dimension_semantics=("parallel",),
            vmem_limit_bytes=vmem_limit),
    )(state, action, w1s, w1a, b1, w2, b2, wq, bq)

    return q_row[0, :B].reshape(B, 1)


if __name__ == "__main__":
    # Small shapes consistent with the module's constructor.
    batch = 8
    input_dims = 16
    hidden_dim = 32
    n_agents = 2
    n_actions = 4

    key = jax.random.PRNGKey(0)
    k_state, k_action, k_params = jax.random.split(key, 3)

    state = jax.random.normal(k_state, (batch, input_dims), jnp.float32)
    action = jax.random.normal(k_action, (batch, n_agents * n_actions), jnp.float32)

    raw_params = init_params(k_params, input_dims, hidden_dim, n_agents, n_actions)
    params = prepare_params(raw_params, input_dims)

    q = critic_forward(state, action, params)
    q = jax.block_until_ready(q)

    # Pure-JAX f32 reference of the original module's forward (with concat).
    w1, b1, w2, b2, wq, bq = raw_params
    x = jnp.concatenate([state, action], axis=1)
    h1 = jnp.maximum(x @ w1.T + b1, 0.0)
    h2 = jnp.maximum(h1 @ w2.T + b2, 0.0)
    q_ref = h2 @ wq.T + bq

    assert q.shape == (batch, 1)
    # bf16 MXU inputs quantize state/action/weights (intentional); relax tolerance.
    tol = 5e-2 if params[0].dtype == jnp.bfloat16 else 1e-4
    assert jnp.allclose(q, q_ref, atol=tol, rtol=tol)

    print("KERNEL_OK")
</pallas_src>

<mosaic_0001>
module attributes {stable_mosaic.version = 11 : i64} {
  func.func @critic_kernel(%arg0: i32, %arg1: memref<8x16xf32, #tpu.memory_space<vmem>>, %arg2: memref<8x8xf32, #tpu.memory_space<vmem>>, %arg3: memref<16x128xbf16, #tpu.memory_space<vmem>>, %arg4: memref<8x128xbf16, #tpu.memory_space<vmem>>, %arg5: memref<1x128xf32, #tpu.memory_space<vmem>>, %arg6: memref<128x128xbf16, #tpu.memory_space<vmem>>, %arg7: memref<1x128xf32, #tpu.memory_space<vmem>>, %arg8: memref<1x128xbf16, #tpu.memory_space<vmem>>, %arg9: memref<1x1xf32, #tpu.memory_space<smem>>, %arg10: memref<1x8xf32, #tpu.memory_space<vmem>>) attributes {dimension_semantics = [#tpu.dimension_semantics<parallel>], iteration_bounds = array<i64: 1>, scalar_prefetch = 0 : i64, scratch_operands = 0 : i64, tpu.core_type = #tpu.core_type<tc>, window_params = [{transform_indices = @transform_0, window_bounds = array<i64: 8, 16>}, {transform_indices = @transform_1, window_bounds = array<i64: 8, 8>}, {pipeline_mode = #tpu.pipeline_mode<synchronous>, transform_indices = @transform_2, window_bounds = array<i64: 16, 128>}, {pipeline_mode = #tpu.pipeline_mode<synchronous>, transform_indices = @transform_3, window_bounds = array<i64: 8, 128>}, {pipeline_mode = #tpu.pipeline_mode<synchronous>, transform_indices = @transform_4, window_bounds = array<i64: 1, 128>}, {pipeline_mode = #tpu.pipeline_mode<synchronous>, transform_indices = @transform_5, window_bounds = array<i64: 128, 128>}, {pipeline_mode = #tpu.pipeline_mode<synchronous>, transform_indices = @transform_6, window_bounds = array<i64: 1, 128>}, {pipeline_mode = #tpu.pipeline_mode<synchronous>, transform_indices = @transform_7, window_bounds = array<i64: 1, 128>}, {transform_indices = @transform_8, window_bounds = array<i64: 1, 1>}, {transform_indices = @transform_9, window_bounds = array<i64: 1, 8>}]} {
    %c0 = arith.constant 0 : index
    %c0_0 = arith.constant 0 : index
    %0 = vector.load %arg1[%c0, %c0_0] : memref<8x16xf32, #tpu.memory_space<vmem>>, vector<8x16xf32>
    %1 = arith.truncf %0 : vector<8x16xf32> to vector<8x16xbf16>
    %c0_1 = arith.constant 0 : index
    %c0_2 = arith.constant 0 : index
    %2 = vector.load %arg3[%c0_1, %c0_2] : memref<16x128xbf16, #tpu.memory_space<vmem>>, vector<16x128xbf16>
    %cst = arith.constant dense<0.000000e+00> : vector<8x128xf32>
    %3 = tpu.matmul %1, %2, %cst {dimension_numbers = #tpu.dot_dimension_numbers<[1], [0], [0], [1], [0, 0, 1, 1], [], []>} : vector<8x16xbf16>, vector<16x128xbf16>, vector<8x128xf32> -> vector<8x128xf32>
    %c0_3 = arith.constant 0 : index
    %c0_4 = arith.constant 0 : index
    %4 = vector.load %arg2[%c0_3, %c0_4] : memref<8x8xf32, #tpu.memory_space<vmem>>, vector<8x8xf32>
    %5 = arith.truncf %4 : vector<8x8xf32> to vector<8x8xbf16>
    %c0_5 = arith.constant 0 : index
    %c0_6 = arith.constant 0 : index
    %6 = vector.load %arg4[%c0_5, %c0_6] : memref<8x128xbf16, #tpu.memory_space<vmem>>, vector<8x128xbf16>
    %cst_7 = arith.constant dense<0.000000e+00> : vector<8x128xf32>
    %7 = tpu.matmul %5, %6, %cst_7 {dimension_numbers = #tpu.dot_dimension_numbers<[1], [0], [0], [1], [0, 0, 1, 1], [], []>} : vector<8x8xbf16>, vector<8x128xbf16>, vector<8x128xf32> -> vector<8x128xf32>
    %8 = arith.addf %3, %7 : vector<8x128xf32>
    %c0_8 = arith.constant 0 : index
    %c0_9 = arith.constant 0 : index
    %9 = vector.load %arg5[%c0_8, %c0_9] : memref<1x128xf32, #tpu.memory_space<vmem>>, vector<1x128xf32>
    %10 = vector.broadcast %9 : vector<1x128xf32> to vector<8x128xf32>
    %11 = arith.addf %8, %10 : vector<8x128xf32>
    %cst_10 = arith.constant 0.000000e+00 : f32
    %12 = vector.broadcast %cst_10 : f32 to vector<8x128xf32>
    %13 = arith.maximumf %11, %12 : vector<8x128xf32>
    %14 = arith.truncf %13 : vector<8x128xf32> to vector<8x128xbf16>
    %c0_11 = arith.constant 0 : index
    %c0_12 = arith.constant 0 : index
    %15 = vector.load %arg6[%c0_11, %c0_12] : memref<128x128xbf16, #tpu.memory_space<vmem>>, vector<128x128xbf16>
    %cst_13 = arith.constant dense<0.000000e+00> : vector<8x128xf32>
    %16 = tpu.matmul %14, %15, %cst_13 {dimension_numbers = #tpu.dot_dimension_numbers<[1], [0], [0], [1], [0, 0, 1, 1], [], []>} : vector<8x128xbf16>, vector<128x128xbf16>, vector<8x128xf32> -> vector<8x128xf32>
    %c0_14 = arith.constant 0 : index
    %c0_15 = arith.constant 0 : index
    %17 = vector.load %arg7[%c0_14, %c0_15] : memref<1x128xf32, #tpu.memory_space<vmem>>, vector<1x128xf32>
    %18 = vector.broadcast %17 : vector<1x128xf32> to vector<8x128xf32>
    %19 = arith.addf %16, %18 : vector<8x128xf32>
    %cst_16 = arith.constant 0.000000e+00 : f32
    %20 = vector.broadcast %cst_16 : f32 to vector<8x128xf32>
    %21 = arith.maximumf %19, %20 : vector<8x128xf32>
    %c0_17 = arith.constant 0 : index
    %c0_18 = arith.constant 0 : index
    %22 = vector.load %arg8[%c0_17, %c0_18] : memref<1x128xbf16, #tpu.memory_space<vmem>>, vector<1x128xbf16>
    %23 = arith.truncf %21 : vector<8x128xf32> to vector<8x128xbf16>
    %cst_19 = arith.constant dense<0.000000e+00> : vector<1x8xf32>
    %24 = tpu.matmul %22, %23, %cst_19 {dimension_numbers = #tpu.dot_dimension_numbers<[1], [1], [0], [0], [0, 0, 1, 0], [], []>} : vector<1x128xbf16>, vector<8x128xbf16>, vector<1x8xf32> -> vector<1x8xf32>
    %c0_20 = arith.constant 0 : index
    %c0_21 = arith.constant 0 : index
    %25 = memref.load %arg9[%c0_20, %c0_21] : memref<1x1xf32, #tpu.memory_space<smem>>
    %26 = vector.broadcast %25 : f32 to vector<1x8xf32>
    %27 = arith.addf %24, %26 : vector<1x8xf32>
    %c0_22 = arith.constant 0 : index
    %c0_23 = arith.constant 0 : index
    %28 = vector.load %arg10[%c0_22, %c0_23] : memref<1x8xf32, #tpu.memory_space<vmem>>, vector<1x8xf32>
    tpu.vector_store %arg10[%c0_22, %c0_23], %27 {strides = array<i32>} : memref<1x8xf32, #tpu.memory_space<vmem>>, vector<1x8xf32>,
    return
  }
  func.func @transform_0(%arg0: i32) -> (i32, i32) {
    %c0_i32 = arith.constant 0 : i32
    %c0_i32_0 = arith.constant 0 : i32
    return %arg0, %c0_i32 : i32, i32
  }
  func.func @transform_1(%arg0: i32) -> (i32, i32) {
    %c0_i32 = arith.constant 0 : i32
    %c0_i32_0 = arith.constant 0 : i32
    return %arg0, %c0_i32 : i32, i32
  }
  func.func @transform_2(%arg0: i32) -> (i32, i32) {
    %c0_i32 = arith.constant 0 : i32
    %c0_i32_0 = arith.constant 0 : i32
    %c0_i32_1 = arith.constant 0 : i32
    return %c0_i32, %c0_i32_0 : i32, i32
  }
  func.func @transform_3(%arg0: i32) -> (i32, i32) {
    %c0_i32 = arith.constant 0 : i32
    %c0_i32_0 = arith.constant 0 : i32
    %c0_i32_1 = arith.constant 0 : i32
    return %c0_i32, %c0_i32_0 : i32, i32
  }
  func.func @transform_4(%arg0: i32) -> (i32, i32) {
    %c0_i32 = arith.constant 0 : i32
    %c0_i32_0 = arith.constant 0 : i32
    %c0_i32_1 = arith.constant 0 : i32
    return %c0_i32, %c0_i32_0 : i32, i32
  }
  func.func @transform_5(%arg0: i32) -> (i32, i32) {
    %c0_i32 = arith.constant 0 : i32
    %c0_i32_0 = arith.constant 0 : i32
    %c0_i32_1 = arith.constant 0 : i32
    return %c0_i32, %c0_i32_0 : i32, i32
  }
  func.func @transform_6(%arg0: i32) -> (i32, i32) {
    %c0_i32 = arith.constant 0 : i32
    %c0_i32_0 = arith.constant 0 : i32
    %c0_i32_1 = arith.constant 0 : i32
    return %c0_i32, %c0_i32_0 : i32, i32
  }
  func.func @transform_7(%arg0: i32) -> (i32, i32) {
    %c0_i32 = arith.constant 0 : i32
    %c0_i32_0 = arith.constant 0 : i32
    %c0_i32_1 = arith.constant 0 : i32
    return %c0_i32, %c0_i32_0 : i32, i32
  }
  func.func @transform_8(%arg0: i32) -> (i32, i32) {
    %c0_i32 = arith.constant 0 : i32
    %c0_i32_0 = arith.constant 0 : i32
    %c0_i32_1 = arith.constant 0 : i32
    return %c0_i32, %c0_i32_0 : i32, i32
  }
  func.func @transform_9(%arg0: i32) -> (i32, i32) {
    %c0_i32 = arith.constant 0 : i32
    %c0_i32_0 = arith.constant 0 : i32
    return %c0_i32, %arg0 : i32, i32
  }
}

</mosaic_0001>

<bundles_post_ra>
// kernel: tpu_custom_call.1
= control target key start
LH: loop header
LB: loop body
LE: loop exit
PB: predicated region body
PF: predicated region fallthrough
CT: control target
= control target key end

     0   :  { %15 = vsyncpa [#allocation4], 0  ;;  %s543_s0 = inlined_call_operand.hbm [shape: f32[8,16], index: 0, kind: input, shape index: {}]   ;;  %s544_s1 = inlined_call_operand.hbm [shape: f32[8,8], index: 1, kind: input, shape index: {}]   ;;  %s545_s2 = inlined_call_operand.hbm [shape: bf16[16,128], index: 2, kind: input, shape index: {}]   ;;  %s546_s3 = inlined_call_operand.vmem [shape: bf16[8,128], index: 3, kind: input, shape index: {}]   ;;  %s547_s4 = inlined_call_operand.vmem [shape: f32[1,128], index: 4, kind: input, shape index: {}]   ;;  %s548_s5 = inlined_call_operand.hbm [shape: bf16[128,128], index: 5, kind: input, shape index: {}]   ;;  %s549_s6 = inlined_call_operand.vmem [shape: f32[1,128], index: 6, kind: input, shape index: {}]   ;;  %s550_s7 = inlined_call_operand.vmem [shape: bf16[1,128], index: 7, kind: input, shape index: {}]   ;;  %s551_s8 = inlined_call_operand.<no memory space> [shape: f32[1,1], index: 8, kind: input, shape index: {}]   ;;  %s552_s9 = inlined_call_operand.hbm [shape: f32[1,8], index: 9, kind: output, shape index: {}]  }
   0x1   :  { %16 = vsyncpa [#allocation7], 0 }
   0x2   :  { %17 = vsyncpa [#allocation10], 0  ;;  %s35_s11 = sshll.u32 %s544_s1, 4  ;;  %s36_s11 = int_to_ptr.hbm [resolvable:$true] %s35_s11 }
   0x3   :  { %18 = vsyncpa [#allocation5], 0  ;;  %s456_s12 = smov [#allocation6]   ;;  %s24_s16 = sshll.u32 %s543_s0, 4  ;;  %s25_s16 = int_to_ptr.hbm [resolvable:$true] %s24_s16 }
   0x4   :  { %s37_s13 = sshll.u32 %s456_s12, 4  ;;  %s457_s17 = smov [#allocation3]   ;;  %s38_s13 = int_to_ptr.vmem [resolvable:$true] %s37_s13 }
   0x5   :  { %40 = dma.hbm_to_vmem [thread:$0]  %s36_s11, 128, %s38_s13, [#allocation7]  }
   0x6   :  { %s26_s18 = sshll.u32 %s457_s17, 4  ;;  %s45_s21 = sshll.u32 %s545_s2, 4  ;;  %s27_s18 = int_to_ptr.vmem [resolvable:$true] %s26_s18  ;;  %s46_s21 = int_to_ptr.hbm [resolvable:$true] %s45_s21 }
   0x7   :  { %29 = dma.hbm_to_vmem [thread:$0]  %s25_s16, 128, %s27_s18, [#allocation4]  }
   0x8   :  { %s458_s1 = smov [#allocation8]   ;;  %s62_s25 = sshll.u32 %s548_s5, 4  ;;  %s63_s25 = int_to_ptr.hbm [resolvable:$true] %s62_s25 }
   0x9   :  { %s47_s22 = sshll.u32 %s458_s1, 4  ;;  %s459_s26 = smov 64   ;;  %s48_s22 = int_to_ptr.vmem [resolvable:$true] %s47_s22 }
   0xa   :  { %s460_s0 = smov 4   ;;  %s461_s27 = smov [#allocation9]  }
   0xb   :  { %53 = dma.hbm_to_vmem [thread:$0]  %s46_s21, 128, %s48_s22, [#allocation7], %s459_s26, %s459_s26, %s460_s0  }
   0xc   :  { %s64_s28 = sshll.u32 %s461_s27, 4  ;;  %s65_s28 = int_to_ptr.vmem [resolvable:$true] %s64_s28 }
   0xd   :  { %70 = dma.hbm_to_vmem [thread:$0]  %s63_s25, 1024, %s65_s28, [#allocation10], %s459_s26, %s459_s26, %s460_s0  }
   0xe   :  { %448 = dma.done.wait [#allocation4], 128  }
   0xf   :  { %449 = vsyncadd [#allocation4], 4294967168 }
  0x10   :  { %450 = dma.done.wait [#allocation7], 256  }
  0x11   :  { %451 = vsyncadd [#allocation7], 4294967040 }
  0x12   :  { %452 = dma.done.wait [#allocation10], 1024  }
  0x13   :  { %453 = vsyncadd [#allocation10], 4294966272  ;;  %vm105_vm0 = vcmask 1043456   ;;  %v100_v0 = vld [vmem:[%s546_s3] sm:$0xf]  ;;  %v310_v1 = vld [vmem:[#allocation8] sm:$0xff]  ;;  %v237_v31 = vstv %s551_s8 }
  0x14   :  { %v98_v2 = vld [vmem:[#allocation6] sm:$0xff]  ;;  %v107_v3 = vsel %vm105_vm0, %v100_v0, 0  ;;  %v94_v5 = vld [vmem:[#allocation3] sm:$0xff]  ;;  %v318_v6 = vld [vmem:[#allocation9 + $0x38] sm:$0xff]  ;;  %139 = vmatpush.bf16.msra.mxu1 %v310_v1  ;;  %vm101_vm1 = vcmask 64512   ;;  %vm128_vm2 = vcmask 130048  }
  0x15   :  { %v99_v4 = vpack.c.bf16 %v98_v2, %v98_v2  ;;  %116 = vmatpush.bf16.msra.mxu0 %v107_v3  ;;  %v95_v7 = vpack.c.bf16 %v94_v5, %v94_v5  ;;  %220 = vmatpush.bf16.msra.mxu2 %v318_v6  ;;  %v317_v8 = vld [vmem:[#allocation9 + $0x30] sm:$0xff]  ;;  %v316_v9 = vld [vmem:[#allocation9 + $0x28] sm:$0xff]  ;;  %v315_v10 = vld [vmem:[#allocation9 + $0x20] sm:$0xff]  ;;  %s462_s14 = smov [#allocation11]   ;;  %vm251_vm3 = vcmask 57344  }
  0x16   :  { %v314_v11 = vld [vmem:[#allocation9 + $0x18] sm:$0xff]  ;;  %v313_v12 = vld [vmem:[#allocation9 + $0x10] sm:$0xff]  ;;  %v312_v13 = vld [vmem:[#allocation9 + $0x8] sm:$0xff]  ;;  %s258_s15 = sshll.u32 %s462_s14, 4  ;;  %s259_s15 = int_to_ptr.vmem [resolvable:$true] %s258_s15 }
  0x17   :  { %277 = vmatmul.msk.bf16.vlgmr.msra.gmra.mxu1 %vm128_vm2, %v95_v7  ;;  %v311_v14 = vld [vmem:[#allocation9] sm:$0xff]  ;;  %v326_v15 = vld [vmem:[%s547_s4] ss:$0 sm:$0xff] }
  0x18   :  { %272 = vmatmul.msk.bf16.vlgmr.msra.gmra.mxu0 %vm101_vm1, %v99_v4  ;;  %v327_v24 = vld [vmem:[%s549_s6] ss:$0 sm:$0xff]  ;;  %s260_s6 = sshll.u32 %s552_s9, 4  ;;  %s261_s6 = int_to_ptr.hbm [resolvable:$true] %s260_s6 }
  0x19   :  { %221 = vmatpush.bf16.msra.mxu2 %v317_v8  ;;  %v234_v30 = vld [vmem:[%s550_s7] sm:$0x1] }
  0x1d   :  { %222 = vmatpush.bf16.msra.mxu2 %v316_v9 }
  0x21   :  { %223 = vmatpush.bf16.msra.mxu2 %v315_v10 }
  0x25   :  { %224 = vmatpush.bf16.msra.mxu2 %v314_v11 }
  0x29   :  { %225 = vmatpush.bf16.msra.mxu2 %v313_v12 }
  0x2d   :  { %226 = vmatpush.bf16.msra.mxu2 %v312_v13 }
  0x31   :  { %227 = vmatpush.bf16.msra.mxu2 %v311_v14 }
  0x94   :  { %v141_v17 = vpop.f32.mrf.mxu1 }
  0x95   :  { %v118_v16 = vpop.f32.mrf.mxu0 }
  0x96   :  { %v142_v18 = vadd.f32 %v141_v17, %v118_v16 }
  0x98   :  { %v149_v19 = vadd.f32 %v326_v15, %v142_v18 }
  0x9a   :  { %v150_v20 = vmax.f32 %v149_v19, 0.0 }
  0x9c   :  { %v151_v21 = vpack.c.bf16 %v150_v20, %v150_v20  ;;  %v143_v23 = vpop.f32.mrf.mxu1 }
  0x9d   :  { %v120_v22 = vpop.f32.mrf.mxu0 }
  0x9e   :  { %228 = vmatmul.bf16.vlgmr.msra.gmra.mxu2 %v151_v21 }
 0x121   :  { %v229_v25 = vpop.f32.mrf.mxu2 }
 0x122   :  { %v230_v26 = vadd.f32 %v327_v24, %v229_v25 }
 0x124   :  { %v233_v27 = vmax.f32 %v230_v26, 0.0 }
 0x126   :  { %v235_v28 = vpack.c.bf16 %v233_v27, %v233_v27 }
 0x128   :  { %245 = vmatpush.bf16.xpose.msra.mxu3 %v235_v28 }
 0x129   :  { %v231_v29 = vpop.f32.mrf.mxu2 }
 0x12f   :  { %246 = vmatmul.bf16.vlgmr.msra.gmra.mxu3 %v234_v30 }
 0x1b2   :  { %v247_v32 = vpop.f32.mrf.mxu3 }
 0x1b3   :  { %v248_v33 = vadd.f32 %v247_v32, %v237_v31 }
 0x1b5   :  { %252 = vst.msk [vmem:[#allocation11] sm:$0x1] %vm251_vm3, %v248_v33 }
 0x1b6   :  { %263 = dma.vmem_to_hbm [thread:$0]  %s259_s15, 16, %s261_s6, [#allocation5]  }
 0x1ba   :  { %v249_v34 = vpop.f32.mrf.mxu3 }
 0x1bb   :  { %454 = dma.done.wait [#allocation5], 16  }
 0x1bc   :  { %455 = vsyncadd [#allocation5], 4294967280 }
 0x1bd   :  { %268 = vsyncpa [#allocation4], 1 }
 0x1be   :  { %269 = vsyncpa [#allocation7], 1 }
 0x1bf   :  { %270 = vsyncpa [#allocation10], 1 }
 0x1c0   :  { %271 = vsyncpa [#allocation5], 1 }

</bundles_post_ra>
